<compile_context>
chip_gen: v7x
topology: tpu7x:2x2x1
jax: 0.10.0
libtpu: 0.0.40
codegen_flags: <defaults>
</compile_context>

<pallas_src>
import jax
import jax.numpy as jnp
from jax.experimental import pallas as pl
from jax.experimental.pallas import tpu as pltpu

HIDDEN = 128
_MAX_TB = 64   # batches per grid step when B is large (multiple of 8 for tiling)


def _mga_kernel(c_ref, v_ref, w1_ref, b1_ref, w2_ref, o_ref):
    # c_ref : [TB*N, C]   flattened (batch, token) rows of [visual ++ text]
    # v_ref : [TB, N, V]
    # w1_ref: [C, H]      b1_ref: [1, H]      w2_ref: [1, H]
    # o_ref : [TB, V]
    tb, n, _ = v_ref.shape

    # Fused first Linear (V+T -> H): one MXU matmul over the whole slab.
    h = jnp.dot(c_ref[...], w1_ref[...], preferred_element_type=jnp.float32)
    h = jnp.maximum(h + b1_ref[...], 0.0)                      # [TB*N, H]

    # Second Linear (H -> 1) as a VPU multiply + lane reduction.
    # (b2 omitted: a scalar shift before softmax cannot change the output.)
    s = jnp.sum(h * w2_ref[...], axis=-1, keepdims=True)       # [TB*N, 1]
    s = s.reshape(tb, n, 1)                                     # per-batch tokens

    # Softmax over the token axis (dim=1 of the original [B, N, 1]).
    m = jnp.max(s, axis=1, keepdims=True)                       # [TB, 1, 1]
    e = jnp.exp(s - m)
    w = e / jnp.sum(e, axis=1, keepdims=True)                   # [TB, N, 1]

    # attended = sum_n w[b, n] * visual[b, n, :]  — sublane reduce on the VPU,
    # written as a single lane-dense [TB, V] store.
    o_ref[...] = jnp.sum(w * v_ref[...], axis=1).astype(o_ref.dtype)


def metadata_guided_attention(visual, text, w1, b1, w2, b2):
    """visual: [B, N, V]; text: [B, N, T]; w1: [V+T, 128]; b1: [128];
    w2: [128, 1]; b2: [1] (unused — softmax is shift-invariant)."""
    if text.ndim == 3 and text.shape[1] == 1 and visual.shape[1] != 1:
        # torch's squeeze(1) would make text 2-D and the subsequent cat with a
        # 3-D visual tensor fail; reject instead of silently miscomputing.
        # TODO(synk): the 2-D-visual contract (visual [B, V], text [B, 1, T]) is a
        # different shape path in the torch module and is not implemented here.
        raise ValueError("text_embedding [B, 1, T] with N > 1 visual is not a "
                         "well-formed input for this module")

    B, N, V = visual.shape
    T = text.shape[-1]
    C = V + T
    H = w1.shape[1]
    del b2  # mathematically a no-op before the softmax

    visual = visual.astype(jnp.float32)
    combined = jnp.concatenate([visual, text.astype(jnp.float32)], axis=-1)
    combined_flat = combined.reshape(B * N, C)          # one big matmul slab
    b1_row = b1.reshape(1, H).astype(jnp.float32)
    w2_row = w2.reshape(1, H).astype(jnp.float32)        # [H, 1] -> [1, H]

    # Batch tiling: TB batches per grid step; for small B the grid collapses to
    # a single step (whole problem in one invocation).
    TB = B if B <= _MAX_TB else _MAX_TB
    assert B % TB == 0, "batch must be divisible by the batch tile"
    assert TB == B or (TB * N) % 8 == 0, "partial-B tiles need sublane alignment"
    grid = (B // TB,)

    return pl.pallas_call(
        _mga_kernel,
        out_shape=jax.ShapeDtypeStruct((B, V), jnp.float32),
        grid=grid,
        in_specs=[
            pl.BlockSpec((TB * N, C), lambda i: (i, 0)),
            pl.BlockSpec((TB, N, V), lambda i: (i, 0, 0)),
            # Weights: constant block indices -> fetched once, reused across steps.
            pl.BlockSpec((C, H), lambda i: (0, 0)),
            pl.BlockSpec((1, H), lambda i: (0, 0)),
            pl.BlockSpec((1, H), lambda i: (0, 0)),
        ],
        out_specs=pl.BlockSpec((TB, V), lambda i: (i, 0)),
        compiler_params=pltpu.CompilerParams(
            dimension_semantics=("parallel",)),   # shard batch tiles across TCs (v7x)
    )(combined_flat, visual, w1.astype(jnp.float32), b1_row, w2_row)


def reference(visual, text, w1, b1, w2, b2):
    combined = jnp.concatenate([visual, text], axis=-1)
    h = jax.nn.relu(combined @ w1 + b1)
    scores = h @ w2 + b2
    weights = jax.nn.softmax(scores, axis=1)
    return jnp.sum(weights * visual, axis=1)


if __name__ == "__main__":
    B, N, V, T = 2, 8, 32, 16

    key = jax.random.PRNGKey(0)
    k_v, k_t, k_w1, k_b1, k_w2, k_b2 = jax.random.split(key, 6)

    visual = jax.random.normal(k_v, (B, N, V), dtype=jnp.float32)
    text = jax.random.normal(k_t, (B, N, T), dtype=jnp.float32)

    # Parameters match nn.Linear(V+T, 128) / nn.Linear(128, 1), stored
    # pre-transposed so the forward is x @ w + b.
    w1 = jax.random.normal(k_w1, (V + T, HIDDEN), dtype=jnp.float32) * 0.05
    b1 = jax.random.normal(k_b1, (HIDDEN,), dtype=jnp.float32) * 0.05
    w2 = jax.random.normal(k_w2, (HIDDEN, 1), dtype=jnp.float32) * 0.05
    b2 = jax.random.normal(k_b2, (1,), dtype=jnp.float32) * 0.05

    out = metadata_guided_attention(visual, text, w1, b1, w2, b2)
    out = jax.block_until_ready(out)

    ref = reference(visual, text, w1, b1, w2, b2)
    assert out.shape == (B, V)
    assert jnp.allclose(out, ref, atol=1e-4, rtol=1e-4)

    print("KERNEL_OK")
</pallas_src>

<mosaic_0001>
module attributes {stable_mosaic.version = 11 : i64} {
  func.func @_mga_kernel(%arg0: i32, %arg1: memref<16x48xf32, #tpu.memory_space<vmem>>, %arg2: memref<2x8x32xf32, #tpu.memory_space<vmem>>, %arg3: memref<48x128xf32, #tpu.memory_space<vmem>>, %arg4: memref<1x128xf32, #tpu.memory_space<vmem>>, %arg5: memref<1x128xf32, #tpu.memory_space<vmem>>, %arg6: memref<2x32xf32, #tpu.memory_space<vmem>>) attributes {dimension_semantics = [#tpu.dimension_semantics<parallel>], iteration_bounds = array<i64: 1>, scalar_prefetch = 0 : i64, scratch_operands = 0 : i64, tpu.core_type = #tpu.core_type<tc>, window_params = [{transform_indices = @transform_0, window_bounds = array<i64: 16, 48>}, {transform_indices = @transform_1, window_bounds = array<i64: 2, 8, 32>}, {pipeline_mode = #tpu.pipeline_mode<synchronous>, transform_indices = @transform_2, window_bounds = array<i64: 48, 128>}, {pipeline_mode = #tpu.pipeline_mode<synchronous>, transform_indices = @transform_3, window_bounds = array<i64: 1, 128>}, {pipeline_mode = #tpu.pipeline_mode<synchronous>, transform_indices = @transform_4, window_bounds = array<i64: 1, 128>}, {transform_indices = @transform_5, window_bounds = array<i64: 2, 32>}]} {
    %c0 = arith.constant 0 : index
    %c0_0 = arith.constant 0 : index
    %0 = vector.load %arg1[%c0, %c0_0] : memref<16x48xf32, #tpu.memory_space<vmem>>, vector<16x48xf32>
    %c0_1 = arith.constant 0 : index
    %c0_2 = arith.constant 0 : index
    %1 = vector.load %arg3[%c0_1, %c0_2] : memref<48x128xf32, #tpu.memory_space<vmem>>, vector<48x128xf32>
    %cst = arith.constant dense<0.000000e+00> : vector<16x128xf32>
    %2 = tpu.matmul %0, %1, %cst {dimension_numbers = #tpu.dot_dimension_numbers<[1], [0], [0], [1], [0, 0, 1, 1], [], []>} : vector<16x48xf32>, vector<48x128xf32>, vector<16x128xf32> -> vector<16x128xf32>
    %c0_3 = arith.constant 0 : index
    %c0_4 = arith.constant 0 : index
    %3 = vector.load %arg4[%c0_3, %c0_4] : memref<1x128xf32, #tpu.memory_space<vmem>>, vector<1x128xf32>
    %4 = vector.broadcast %3 : vector<1x128xf32> to vector<16x128xf32>
    %5 = arith.addf %2, %4 : vector<16x128xf32>
    %cst_5 = arith.constant 0.000000e+00 : f32
    %6 = vector.broadcast %cst_5 : f32 to vector<16x128xf32>
    %7 = arith.maximumf %5, %6 : vector<16x128xf32>
    %c0_6 = arith.constant 0 : index
    %c0_7 = arith.constant 0 : index
    %8 = vector.load %arg5[%c0_6, %c0_7] : memref<1x128xf32, #tpu.memory_space<vmem>>, vector<1x128xf32>
    %9 = vector.broadcast %8 : vector<1x128xf32> to vector<16x128xf32>
    %10 = arith.mulf %7, %9 : vector<16x128xf32>
    %cst_8 = arith.constant dense<0.000000e+00> : vector<16xf32>
    %11 = vector.multi_reduction <add>, %10, %cst_8 [1] : vector<16x128xf32> to vector<16xf32>
    %12 = vector.shape_cast %11 : vector<16xf32> to vector<16x1xf32>
    %13 = vector.shape_cast %12 : vector<16x1xf32> to vector<2x8x1xf32>
    %cst_9 = arith.constant dense<0xFF800000> : vector<2x1xf32>
    %14 = vector.multi_reduction <maximumf>, %13, %cst_9 [1] : vector<2x8x1xf32> to vector<2x1xf32>
    %15 = vector.shape_cast %14 : vector<2x1xf32> to vector<2x1x1xf32>
    %16 = vector.broadcast %15 : vector<2x1x1xf32> to vector<2x8x1xf32>
    %17 = arith.subf %13, %16 : vector<2x8x1xf32>
    %18 = math.exp %17 : vector<2x8x1xf32>
    %cst_10 = arith.constant dense<0.000000e+00> : vector<2x1xf32>
    %19 = vector.multi_reduction <add>, %18, %cst_10 [1] : vector<2x8x1xf32> to vector<2x1xf32>
    %20 = vector.shape_cast %19 : vector<2x1xf32> to vector<2x1x1xf32>
    %21 = vector.broadcast %20 : vector<2x1x1xf32> to vector<2x8x1xf32>
    %22 = arith.divf %18, %21 : vector<2x8x1xf32>
    %c0_11 = arith.constant 0 : index
    %c0_12 = arith.constant 0 : index
    %c0_13 = arith.constant 0 : index
    %23 = vector.load %arg2[%c0_11, %c0_12, %c0_13] : memref<2x8x32xf32, #tpu.memory_space<vmem>>, vector<2x8x32xf32>
    %24 = vector.broadcast %22 : vector<2x8x1xf32> to vector<2x8x32xf32>
    %25 = arith.mulf %24, %23 : vector<2x8x32xf32>
    %cst_14 = arith.constant dense<0.000000e+00> : vector<2x32xf32>
    %26 = vector.multi_reduction <add>, %25, %cst_14 [1] : vector<2x8x32xf32> to vector<2x32xf32>
    %c0_15 = arith.constant 0 : index
    %c0_16 = arith.constant 0 : index
    %27 = vector.load %arg6[%c0_15, %c0_16] : memref<2x32xf32, #tpu.memory_space<vmem>>, vector<2x32xf32>
    tpu.vector_store %arg6[%c0_15, %c0_16], %26 {strides = array<i32>} : memref<2x32xf32, #tpu.memory_space<vmem>>, vector<2x32xf32>,
    return
  }
  func.func @transform_0(%arg0: i32) -> (i32, i32) {
    %c0_i32 = arith.constant 0 : i32
    %c0_i32_0 = arith.constant 0 : i32
    return %arg0, %c0_i32 : i32, i32
  }
  func.func @transform_1(%arg0: i32) -> (i32, i32, i32) {
    %c0_i32 = arith.constant 0 : i32
    %c0_i32_0 = arith.constant 0 : i32
    %c0_i32_1 = arith.constant 0 : i32
    return %arg0, %c0_i32, %c0_i32_0 : i32, i32, i32
  }
  func.func @transform_2(%arg0: i32) -> (i32, i32) {
    %c0_i32 = arith.constant 0 : i32
    %c0_i32_0 = arith.constant 0 : i32
    %c0_i32_1 = arith.constant 0 : i32
    return %c0_i32, %c0_i32_0 : i32, i32
  }
  func.func @transform_3(%arg0: i32) -> (i32, i32) {
    %c0_i32 = arith.constant 0 : i32
    %c0_i32_0 = arith.constant 0 : i32
    %c0_i32_1 = arith.constant 0 : i32
    return %c0_i32, %c0_i32_0 : i32, i32
  }
  func.func @transform_4(%arg0: i32) -> (i32, i32) {
    %c0_i32 = arith.constant 0 : i32
    %c0_i32_0 = arith.constant 0 : i32
    %c0_i32_1 = arith.constant 0 : i32
    return %c0_i32, %c0_i32_0 : i32, i32
  }
  func.func @transform_5(%arg0: i32) -> (i32, i32) {
    %c0_i32 = arith.constant 0 : i32
    %c0_i32_0 = arith.constant 0 : i32
    return %arg0, %c0_i32 : i32, i32
  }
}

</mosaic_0001>

<bundles_post_ra>
// kernel: tpu_custom_call.1
= control target key start
LH: loop header
LB: loop body
LE: loop exit
PB: predicated region body
PF: predicated region fallthrough
CT: control target
= control target key end

     0   :  { %10 = vsyncpa [#allocation3], 0  ;;  %s505_s0 = inlined_call_operand.hbm [shape: f32[16,48], index: 0, kind: input, shape index: {}]   ;;  %s506_s1 = inlined_call_operand.hbm [shape: f32[2,8,32], index: 1, kind: input, shape index: {}]   ;;  %s507_s2 = inlined_call_operand.hbm [shape: f32[48,128], index: 2, kind: input, shape index: {}]   ;;  %s508_s3 = inlined_call_operand.vmem [shape: f32[1,128], index: 3, kind: input, shape index: {}]   ;;  %s509_s4 = inlined_call_operand.vmem [shape: f32[1,128], index: 4, kind: input, shape index: {}]   ;;  %s510_s5 = inlined_call_operand.hbm [shape: f32[2,32], index: 5, kind: output, shape index: {}]  }
   0x1   :  { %11 = vsyncpa [#allocation6], 0 }
   0x2   :  { %12 = vsyncpa [#allocation4], 0  ;;  %s397_s18 = smov [#allocation5]   ;;  %s398_s20 = smov [#allocation2]  }
   0x3   :  { %s30_s19 = sshll.u32 %s397_s18, 4  ;;  %s18_s21 = sshll.u32 %s398_s20, 4  ;;  %s31_s19 = int_to_ptr.vmem [resolvable:$true] %s30_s19  ;;  %s433_s21 = int_to_ptr.vmem [resolvable:$true] %s18_s21 }
   0x4   :  { %s303_s24 = scalar_lea.hbm %s506_s1, 256 }
   0x5   :  { %p304_p0 = scmp.ne.s32.totalorder %s506_s1, %s303_s24  ;;  %p307_p1 = scmp.lt.u32.totalorder %s303_s24, %s506_s1 }
   0x7   :  { %p309_p2 = pnand %p307_p1, %p304_p0 }
   0x9   :  { %312 = shalt.err (!%p309_p2)
}
   0xa   :  { %s313_s29 = scalar_lea.vmem %s31_s19, 256  ;;  %p318_p4 = scmp.lt.s32.totalorder %s31_s19, %s31_s19 }
   0xb   :  { %p314_p3 = scmp.ne.s32.totalorder %s31_s19, %s313_s29  ;;  %p319_p5 = scmp.lt.s32.totalorder %s313_s29, %s313_s29 }
   0xd   :  { %p320_p6 = por %p319_p5, %p318_p4 }
   0xf   :  { %p321_p7 = pnand %p320_p6, %p314_p3 }
  0x11   :  { %324 = shalt.err (!%p321_p7)
}
  0x12   :  { %s399_s30 = smov 128   ;;  %s400_s6 = smov 8  }
  0x13   :  { %36 = dma.hbm_to_vmem [thread:$0]  %s506_s1, 256, %s31_s19, [#allocation6], %s399_s30, %s399_s30, %s400_s6  }
  0x14   :  { %s325_s11 = scalar_lea.hbm %s505_s0, 256 }
  0x15   :  { %p326_p8 = scmp.ne.s32.totalorder %s505_s0, %s325_s11  ;;  %p329_p9 = scmp.lt.u32.totalorder %s325_s11, %s505_s0 }
  0x17   :  { %p331_p10 = pnand %p329_p9, %p326_p8 }
  0x19   :  { %334 = shalt.err (!%p331_p10)
}
  0x1a   :  { %s335_s16 = scalar_lea.vmem %s433_s21, 256  ;;  %p340_p12 = scmp.lt.s32.totalorder %s433_s21, %s433_s21 }
  0x1b   :  { %p336_p11 = scmp.ne.s32.totalorder %s433_s21, %s335_s16  ;;  %p341_p13 = scmp.lt.s32.totalorder %s335_s16, %s335_s16 }
  0x1d   :  { %p342_p0 = por %p341_p13, %p340_p12 }
  0x1f   :  { %p343_p1 = pnand %p342_p0, %p336_p11 }
  0x21   :  { %346 = shalt.err (!%p343_p1)
}
  0x22   :  { %24 = dma.hbm_to_vmem [thread:$0]  %s505_s0, 256, %s433_s21, [#allocation3], %s399_s30, %s399_s30, %s400_s6  }
  0x23   :  { %s401_s18 = smov [#allocation7]   ;;  %s347_s23 = scalar_lea.hbm %s507_s2, 768 }
  0x24   :  { %s42_s19 = sshll.u32 %s401_s18, 4  ;;  %p348_p2 = scmp.ne.s32.totalorder %s507_s2, %s347_s23  ;;  %s43_s19 = int_to_ptr.vmem [resolvable:$true] %s42_s19 }
  0x25   :  { %p351_p3 = scmp.lt.u32.totalorder %s347_s23, %s507_s2 }
  0x27   :  { %p353_p4 = pnand %p351_p3, %p348_p2 }
  0x29   :  { %356 = shalt.err (!%p353_p4)
}
  0x2a   :  { %s357_s28 = scalar_lea.vmem %s43_s19, 768  ;;  %p362_p6 = scmp.lt.s32.totalorder %s43_s19, %s43_s19 }
  0x2b   :  { %p358_p5 = scmp.ne.s32.totalorder %s43_s19, %s357_s28  ;;  %p363_p7 = scmp.lt.s32.totalorder %s357_s28, %s357_s28 }
  0x2d   :  { %p364_p8 = por %p363_p7, %p362_p6 }
  0x2f   :  { %p365_p9 = pnand %p364_p8, %p358_p5 }
  0x31   :  { %368 = shalt.err (!%p365_p9)
}
  0x32   :  { %48 = dma.hbm_to_vmem [thread:$0]  %s507_s2, 768, %s43_s19, [#allocation6], %s399_s30, %s399_s30, %s400_s6  }
  0x33   :  { %391 = dma.done.wait [#allocation3], 256  }
  0x34   :  { %392 = vsyncadd [#allocation3], 4294967040 }
  0x35   :  { %393 = dma.done.wait [#allocation6], 1024  }
  0x36   :  { %394 = vsyncadd [#allocation6], 4294966272  ;;  %v64_v0 = vld [vmem:[#allocation7] sm:$0xff]  ;;  %v65_v1 = vld [vmem:[#allocation7 + $0x8] sm:$0xff]  ;;  %vm77_vm0 = vcmask 392192   ;;  %vm212_vm1 = vcmask 261120  }
  0x37   :  { %v66_v2 = vld [vmem:[#allocation7 + $0x10] sm:$0xff]  ;;  %v277_v3 = vpack.c.bf16 %v65_v1, %v64_v0  ;;  %v67_v4 = vld [vmem:[#allocation7 + $0x18] sm:$0xff]  ;;  %v68_v6 = vld [vmem:[#allocation7 + $0x20] sm:$0xff]  ;;  %vm229_vm2 = vcmask 1041409   ;;  %vm232_vm3 = vcmask 254976  }
  0x38   :  { %v281_v5 = vpack.c.bf16 %v67_v4, %v66_v2  ;;  %v69_v7 = vld [vmem:[#allocation7 + $0x28] sm:$0xff]  ;;  %v62_v8 = vld [vmem:[#allocation2] sm:$0xff]  ;;  %v208_v54 = vld [vmem:[#allocation5] sm:$0xff] }
  0x39   :  { %278 = vmatprep.subr.bf16.mxu0 %v277_v3  ;;  %274 = vmatprep.mubr.msk.f32.mxu0 %vm77_vm0, %v62_v8  ;;  %v285_v9 = vpack.c.bf16 %v69_v7, %v68_v6  ;;  %v63_v10 = vld [vmem:[#allocation2 + $0x8] sm:$0xff]  ;;  %v250_v11 = vld [vmem:[%s508_s3] ss:$0 sm:$0xff]  ;;  %v209_v58 = vld [vmem:[#allocation5 + $0x8] sm:$0xff]  ;;  %s402_s3 = smov [#allocation8]  }
  0x3a   :  { %280 = vmatpush3.bf16.msra.mxu0 %v277_v3  ;;  %v253_v16 = vld [vmem:[%s509_s4] ss:$0 sm:$0xff]  ;;  %s240_s4 = sshll.u32 %s402_s3, 4  ;;  %s241_s4 = int_to_ptr.vmem [resolvable:$true] %s240_s4 }
  0x3b   :  { %282 = vmatprep.subr.bf16.mxu0 %v281_v5  ;;  %s369_s7 = scalar_lea.vmem %s241_s4, 32  ;;  %p374_p11 = scmp.lt.s32.totalorder %s241_s4, %s241_s4 }
  0x3c   :  { %p370_p10 = scmp.ne.s32.totalorder %s241_s4, %s369_s7  ;;  %p375_p12 = scmp.lt.s32.totalorder %s369_s7, %s369_s7 }
  0x3e   :  { %284 = vmatpush3.bf16.msra.mxu0 %v281_v5  ;;  %p376_p13 = por %p375_p12, %p374_p11 }
  0x3f   :  { %286 = vmatprep.subr.bf16.mxu0 %v285_v9 }
  0x40   :  { %p377_p0 = pnand %p376_p13, %p370_p10 }
  0x42   :  { %288 = vmatpush3.bf16.msra.mxu0 %v285_v9 }
  0x45   :  { %275 = vmatmul.mubr.msk.f32.vlgmr.msra.gmra.mrb[0].mxu0 %vm77_vm0, %v63_v10 }
 0x118   :  { %v276_v12 = vpop.f32.mrb[0].mxu0 }
 0x119   :  { %v150_v13 = vpop.f32.mrb[1].mxu0  ;;  %v156_v14 = vadd.f32 %v276_v12, %v250_v11 }
 0x11a   :  { %v151_v15 = vadd.f32 %v250_v11, %v150_v13 }
 0x11b   :  { %v160_v18 = vmax.f32 %v156_v14, 0.0 }
 0x11c   :  { %v159_v17 = vmax.f32 %v151_v15, 0.0 }
 0x11d   :  { %v169_v20 = vmul.f32 %v253_v16, %v160_v18 }
 0x11e   :  { %v168_v19 = vmul.f32 %v253_v16, %v159_v17 }
 0x120   :  { %170 = vadd.xlane.f32.xlu0 %v168_v19 }
 0x124   :  { %172 = vadd.xlane.f32.xlu0 %v169_v20 }
 0x1ad   :  { %v171_v21 = vpop.xlane.xlu0 %170 }
 0x1ae   :  { %v174_v22 = vrot.slane %v171_v21, 4 }
 0x1b0   :  { %v175_v23 = vmax.f32 %v171_v21, %v174_v22 }
 0x1b1   :  { %v173_v24 = vpop.xlane.xlu0 %172 }
 0x1b2   :  { %v176_v25 = vrot.slane %v175_v23, 2  ;;  %v180_v26 = vrot.slane %v173_v24, 4 }
 0x1b4   :  { %v177_v27 = vmax.f32 %v175_v23, %v176_v25  ;;  %v181_v28 = vmax.f32 %v173_v24, %v180_v26 }
 0x1b6   :  { %v178_v29 = vrot.slane %v177_v27, 1  ;;  %v182_v30 = vrot.slane %v181_v28, 2 }
 0x1b8   :  { %v179_v31 = vmax.f32 %v177_v27, %v178_v29  ;;  %v183_v32 = vmax.f32 %v181_v28, %v182_v30 }
 0x1ba   :  { %v186_v33 = vsub.f32 %v171_v21, %v179_v31  ;;  %v184_v34 = vrot.slane %v183_v32, 1 }
 0x1bc   :  { %v188_v35 = vmul.f32 1.442695, %v186_v33  ;;  %v185_v36 = vmax.f32 %v183_v32, %v184_v34 }
 0x1be   :  { %295 = vpow2.f32 %v188_v35  ;;  %v187_v37 = vsub.f32 %v173_v24, %v185_v36 }
 0x1c0   :  { %v190_v38 = vmul.f32 1.442695, %v187_v37 }
 0x1c2   :  { %297 = vpow2.f32 %v190_v38 }
 0x1c8   :  { %v296_v39 = vpop.eup %295 }
 0x1c9   :  { %v192_v40 = vrot.slane %v296_v39, 4 }
 0x1cb   :  { %v193_v41 = vadd.f32 %v296_v39, %v192_v40 }
 0x1cc   :  { %v298_v42 = vpop.eup %297 }
 0x1cd   :  { %v194_v43 = vrot.slane %v193_v41, 2  ;;  %v198_v44 = vrot.slane %v298_v42, 4 }
 0x1cf   :  { %v199_v45 = vadd.f32 %v298_v42, %v198_v44  ;;  %v195_v46 = vadd.f32 %v194_v43, %v193_v41 }
 0x1d1   :  { %v200_v47 = vrot.slane %v199_v45, 2  ;;  %v196_v48 = vrot.slane %v195_v46, 1 }
 0x1d3   :  { %v201_v49 = vadd.f32 %v200_v47, %v199_v45  ;;  %v197_v50 = vadd.f32 %v196_v48, %v195_v46 }
 0x1d5   :  { %v202_v51 = vrot.slane %v201_v49, 1  ;;  %299 = vrcp.f32 %v197_v50 }
 0x1d7   :  { %v203_v52 = vadd.f32 %v202_v51, %v201_v49 }
 0x1d9   :  { %301 = vrcp.f32 %v203_v52 }
 0x1df   :  { %v300_v53 = vpop.eup %299 }
 0x1e0   :  { %v205_v55 = vmul.f32 %v300_v53, %v296_v39 }
 0x1e2   :  { %v210_v56 = vmul.f32 %v208_v54, %v205_v55 }
 0x1e3   :  { %v302_v57 = vpop.eup %301 }
 0x1e4   :  { %v207_v59 = vmul.f32 %v302_v57, %v298_v42  ;;  %v213_v60 = vsel %vm212_vm1, %v210_v56, 0.0 }
 0x1e5   :  { %v214_v61 = vrot.slane %v213_v60, 4 }
 0x1e6   :  { %v211_v62 = vmul.f32 %v209_v58, %v207_v59 }
 0x1e7   :  { %v215_v63 = vadd.f32 %v214_v61, %v213_v60 }
 0x1e8   :  { %v220_v0 = vsel %vm212_vm1, %v211_v62, 0.0 }
 0x1e9   :  { %v216_v1 = vrot.slane %v215_v63, 2  ;;  %v221_v2 = vrot.slane %v220_v0, 4 }
 0x1eb   :  { %v217_v3 = vadd.f32 %v216_v1, %v215_v63  ;;  %v222_v4 = vadd.f32 %v221_v2, %v220_v0 }
 0x1ed   :  { %v223_v5 = vrot.slane %v222_v4, 2  ;;  %v218_v6 = vrot.slane %v217_v3, 1 }
 0x1ef   :  { %v224_v7 = vadd.f32 %v223_v5, %v222_v4  ;;  %v219_v9 = vadd.f32 %v218_v6, %v217_v3 }
 0x1f1   :  { %v225_v8 = vrot.slane %v224_v7, 1 }
 0x1f3   :  { %v226_v10 = vadd.f32 %v225_v8, %v224_v7 }
 0x1f5   :  { %v230_v11 = vsel %vm229_vm2, %v226_v10, %v219_v9 }
 0x1f6   :  { %233 = vst.msk [vmem:[#allocation8] sm:$0x3] %vm232_vm3, %v230_v11 }
 0x1f7   :  { %380 = shalt.err (!%p377_p0)
}
 0x1f8   :  { %s381_s10 = scalar_lea.hbm %s510_s5, 32 }
 0x1f9   :  { %p382_p1 = scmp.ne.s32.totalorder %s510_s5, %s381_s10  ;;  %p385_p2 = scmp.lt.u32.totalorder %s381_s10, %s510_s5 }
 0x1fb   :  { %p387_p3 = pnand %p385_p2, %p382_p1 }
 0x1fd   :  { %390 = shalt.err (!%p387_p3)
}
 0x1fe   :  { %243 = dma.vmem_to_hbm [thread:$0]  %s241_s4, 32, %s510_s5, [#allocation4]  }
 0x1ff   :  { %395 = dma.done.wait [#allocation4], 32  }
 0x200   :  { %396 = vsyncadd [#allocation4], 4294967264 }
 0x201   :  { %247 = vsyncpa [#allocation3], 1 }
 0x202   :  { %248 = vsyncpa [#allocation6], 1 }
 0x203   :  { %249 = vsyncpa [#allocation4], 1 }

</bundles_post_ra>
